<compile_context>
chip_gen: v7x
topology: tpu7x:2x2x1
jax: 0.10.0
libtpu: 0.0.40
codegen_flags: <defaults>
</compile_context>

<pallas_src>
import jax
import jax.numpy as jnp
from jax import lax
from jax.experimental import pallas as pl
from jax.experimental.pallas import tpu as pltpu

IN_DIM = 28 * 28      # 784
HID = 64
OUT_DIM = 10
HID_PAD = 128         # lane-dense hidden width
OUT_PAD = 128         # lane-dense class width (sliced back to 10 in wrapper)
MAX_TILE = 512        # rows per grid step for large batches (fits v5e/v6e/v7x VMEM)


def _round_up(n, m):
    return ((n + m - 1) // m) * m


def _mlp_kernel(x_ref, w1_ref, b1_ref, w2_ref, b2_ref,
                w3_ref, b3_ref, w4_ref, b4_ref, o_ref):
    """Whole fused forward pass for one batch tile (bf16 matmuls, f32 accum)."""
    x = x_ref[...]                                            # (tile, 784) bf16

    h = jnp.dot(x, w1_ref[...], preferred_element_type=jnp.float32) + b1_ref[...]
    h = jnp.maximum(h, 0.0).astype(jnp.bfloat16)

    h = jnp.dot(h, w2_ref[...], preferred_element_type=jnp.float32) + b2_ref[...]
    h = jnp.maximum(h, 0.0).astype(jnp.bfloat16)

    h = jnp.dot(h, w3_ref[...], preferred_element_type=jnp.float32) + b3_ref[...]
    h = jnp.maximum(h, 0.0).astype(jnp.bfloat16)

    logits = jnp.dot(h, w4_ref[...], preferred_element_type=jnp.float32) + b4_ref[...]

    # Mask padded class columns so log_softmax normalizes over the real 10 only.
    col = lax.broadcasted_iota(jnp.int32, logits.shape, 1)
    logits = jnp.where(col < OUT_DIM, logits, jnp.float32(-1e30))

    # Numerically stable log_softmax over the class dim (PyTorch dim=1).
    m = jnp.max(logits, axis=-1, keepdims=True)
    shifted = logits - m
    lse = jnp.log(jnp.sum(jnp.exp(shifted), axis=-1, keepdims=True))
    o_ref[...] = (shifted - lse).astype(o_ref.dtype)


@jax.jit
def net_forward(x, kparams):
    """x: (B, 784) float32.  kparams: padded bf16 weights / f32 row biases."""
    B = x.shape[0]

    # Tile choice: big batches get 512-row tiles; small batches use one padded
    # tile (multiple of 16 for clean bf16 sublane packing).
    tile = min(MAX_TILE, _round_up(B, 16))
    Bp = _round_up(B, tile)

    xb = x.astype(jnp.bfloat16)
    if Bp != B:
        xb = jnp.pad(xb, ((0, Bp - B), (0, 0)))

    grid = (Bp // tile,)

    x_spec = pl.BlockSpec((tile, IN_DIM), lambda i: (i, 0))
    o_spec = pl.BlockSpec((tile, OUT_PAD), lambda i: (i, 0))

    def full(shape):
        return pl.BlockSpec(shape, lambda i: (0,) * len(shape))

    in_specs = [
        x_spec,
        full((IN_DIM, HID_PAD)),  full((1, HID_PAD)),
        full((HID_PAD, HID_PAD)), full((1, HID_PAD)),
        full((HID_PAD, HID_PAD)), full((1, HID_PAD)),
        full((HID_PAD, OUT_PAD)), full((1, OUT_PAD)),
    ]

    out = pl.pallas_call(
        _mlp_kernel,
        out_shape=jax.ShapeDtypeStruct((Bp, OUT_PAD), jnp.float32),
        grid_spec=pltpu.PrefetchScalarGridSpec(
            num_scalar_prefetch=0,
            grid=grid,
            in_specs=in_specs,
            out_specs=o_spec,
        ),
        compiler_params=pltpu.CompilerParams(
            dimension_semantics=("parallel",)),
    )(xb,
      kparams["w1"], kparams["b1"],
      kparams["w2"], kparams["b2"],
      kparams["w3"], kparams["b3"],
      kparams["w4"], kparams["b4"])

    # Strip batch padding and the 118 padded class columns.
    return out[:B, :OUT_DIM]


def init_params(key):
    """Deterministic synthetic weights (shapes from Net.__init__), f32, (in,out)."""
    ks = jax.random.split(key, 8)

    def lin(kw, kb, fan_in, fan_out):
        bound = 1.0 / jnp.sqrt(fan_in)
        w = jax.random.uniform(kw, (fan_in, fan_out), jnp.float32, -bound, bound)
        b = jax.random.uniform(kb, (1, fan_out), jnp.float32, -bound, bound)
        return w, b

    w1, b1 = lin(ks[0], ks[1], IN_DIM, HID)
    w2, b2 = lin(ks[2], ks[3], HID, HID)
    w3, b3 = lin(ks[4], ks[5], HID, HID)
    w4, b4 = lin(ks[6], ks[7], HID, OUT_DIM)
    return dict(w1=w1, b1=b1, w2=w2, b2=b2, w3=w3, b3=b3, w4=w4, b4=b4)


def prepare_kernel_params(p):
    """Zero-pad to lane-dense widths; weights -> bf16, biases stay f32."""
    def padw(w, in_pad, out_pad):
        wi, wo = w.shape
        return jnp.pad(w, ((0, in_pad - wi), (0, out_pad - wo))).astype(jnp.bfloat16)

    def padb(b, out_pad):
        return jnp.pad(b, ((0, 0), (0, out_pad - b.shape[1]))).astype(jnp.float32)

    return dict(
        w1=padw(p["w1"], IN_DIM, HID_PAD),  b1=padb(p["b1"], HID_PAD),
        w2=padw(p["w2"], HID_PAD, HID_PAD), b2=padb(p["b2"], HID_PAD),
        w3=padw(p["w3"], HID_PAD, HID_PAD), b3=padb(p["b3"], HID_PAD),
        w4=padw(p["w4"], HID_PAD, OUT_PAD), b4=padb(p["b4"], OUT_PAD),
    )


def reference_forward(x, p):
    """Pure-JAX reference with the same bf16-operand / f32-accumulate precision."""
    def mm(a, w):
        return jnp.dot(a.astype(jnp.bfloat16), w.astype(jnp.bfloat16),
                       preferred_element_type=jnp.float32)

    h = jnp.maximum(mm(x, p["w1"]) + p["b1"], 0.0)
    h = jnp.maximum(mm(h, p["w2"]) + p["b2"], 0.0)
    h = jnp.maximum(mm(h, p["w3"]) + p["b3"], 0.0)
    logits = mm(h, p["w4"]) + p["b4"]
    return jax.nn.log_softmax(logits, axis=1)


if __name__ == "__main__":
    key = jax.random.PRNGKey(0)
    kx, kp = jax.random.split(key)

    B = 8  # small smoke-test batch (wrapper pads to one 16-row tile)
    x = jax.random.normal(kx, (B, IN_DIM), dtype=jnp.float32)

    params = init_params(kp)
    kparams = prepare_kernel_params(params)

    out = net_forward(x, kparams)
    out = jax.block_until_ready(out)

    ref = reference_forward(x, params)
    assert out.shape == (B, OUT_DIM)
    assert jnp.allclose(out, ref, atol=1e-3, rtol=1e-3), "mismatch vs reference"
    # rows should be valid log-probabilities
    assert jnp.allclose(jnp.sum(jnp.exp(out), axis=1), 1.0, atol=1e-3)

    print("KERNEL_OK")
</pallas_src>

<mosaic_0001>
module attributes {stable_mosaic.version = 11 : i64} {
  func.func @_mlp_kernel(%arg0: i32, %arg1: memref<16x784xbf16, #tpu.memory_space<vmem>>, %arg2: memref<784x128xbf16, #tpu.memory_space<vmem>>, %arg3: memref<1x128xf32, #tpu.memory_space<vmem>>, %arg4: memref<128x128xbf16, #tpu.memory_space<vmem>>, %arg5: memref<1x128xf32, #tpu.memory_space<vmem>>, %arg6: memref<128x128xbf16, #tpu.memory_space<vmem>>, %arg7: memref<1x128xf32, #tpu.memory_space<vmem>>, %arg8: memref<128x128xbf16, #tpu.memory_space<vmem>>, %arg9: memref<1x128xf32, #tpu.memory_space<vmem>>, %arg10: memref<16x128xf32, #tpu.memory_space<vmem>>) attributes {dimension_semantics = [#tpu.dimension_semantics<parallel>], iteration_bounds = array<i64: 1>, scalar_prefetch = 0 : i64, scratch_operands = 0 : i64, tpu.core_type = #tpu.core_type<tc>, window_params = [{transform_indices = @transform_0, window_bounds = array<i64: 16, 784>}, {pipeline_mode = #tpu.pipeline_mode<synchronous>, transform_indices = @transform_1, window_bounds = array<i64: 784, 128>}, {pipeline_mode = #tpu.pipeline_mode<synchronous>, transform_indices = @transform_2, window_bounds = array<i64: 1, 128>}, {pipeline_mode = #tpu.pipeline_mode<synchronous>, transform_indices = @transform_3, window_bounds = array<i64: 128, 128>}, {pipeline_mode = #tpu.pipeline_mode<synchronous>, transform_indices = @transform_4, window_bounds = array<i64: 1, 128>}, {pipeline_mode = #tpu.pipeline_mode<synchronous>, transform_indices = @transform_5, window_bounds = array<i64: 128, 128>}, {pipeline_mode = #tpu.pipeline_mode<synchronous>, transform_indices = @transform_6, window_bounds = array<i64: 1, 128>}, {pipeline_mode = #tpu.pipeline_mode<synchronous>, transform_indices = @transform_7, window_bounds = array<i64: 128, 128>}, {pipeline_mode = #tpu.pipeline_mode<synchronous>, transform_indices = @transform_8, window_bounds = array<i64: 1, 128>}, {transform_indices = @transform_9, window_bounds = array<i64: 16, 128>}]} {
    %c0 = arith.constant 0 : index
    %c0_0 = arith.constant 0 : index
    %0 = vector.load %arg1[%c0, %c0_0] : memref<16x784xbf16, #tpu.memory_space<vmem>>, vector<16x784xbf16>
    %c0_1 = arith.constant 0 : index
    %c0_2 = arith.constant 0 : index
    %1 = vector.load %arg2[%c0_1, %c0_2] : memref<784x128xbf16, #tpu.memory_space<vmem>>, vector<784x128xbf16>
    %cst = arith.constant dense<0.000000e+00> : vector<16x128xf32>
    %2 = tpu.matmul %0, %1, %cst {dimension_numbers = #tpu.dot_dimension_numbers<[1], [0], [0], [1], [0, 0, 1, 1], [], []>} : vector<16x784xbf16>, vector<784x128xbf16>, vector<16x128xf32> -> vector<16x128xf32>
    %c0_3 = arith.constant 0 : index
    %c0_4 = arith.constant 0 : index
    %3 = vector.load %arg3[%c0_3, %c0_4] : memref<1x128xf32, #tpu.memory_space<vmem>>, vector<1x128xf32>
    %4 = vector.broadcast %3 : vector<1x128xf32> to vector<16x128xf32>
    %5 = arith.addf %2, %4 : vector<16x128xf32>
    %cst_5 = arith.constant 0.000000e+00 : f32
    %6 = vector.broadcast %cst_5 : f32 to vector<16x128xf32>
    %7 = arith.maximumf %5, %6 : vector<16x128xf32>
    %8 = arith.truncf %7 : vector<16x128xf32> to vector<16x128xbf16>
    %c0_6 = arith.constant 0 : index
    %c0_7 = arith.constant 0 : index
    %9 = vector.load %arg4[%c0_6, %c0_7] : memref<128x128xbf16, #tpu.memory_space<vmem>>, vector<128x128xbf16>
    %cst_8 = arith.constant dense<0.000000e+00> : vector<16x128xf32>
    %10 = tpu.matmul %8, %9, %cst_8 {dimension_numbers = #tpu.dot_dimension_numbers<[1], [0], [0], [1], [0, 0, 1, 1], [], []>} : vector<16x128xbf16>, vector<128x128xbf16>, vector<16x128xf32> -> vector<16x128xf32>
    %c0_9 = arith.constant 0 : index
    %c0_10 = arith.constant 0 : index
    %11 = vector.load %arg5[%c0_9, %c0_10] : memref<1x128xf32, #tpu.memory_space<vmem>>, vector<1x128xf32>
    %12 = vector.broadcast %11 : vector<1x128xf32> to vector<16x128xf32>
    %13 = arith.addf %10, %12 : vector<16x128xf32>
    %cst_11 = arith.constant 0.000000e+00 : f32
    %14 = vector.broadcast %cst_11 : f32 to vector<16x128xf32>
    %15 = arith.maximumf %13, %14 : vector<16x128xf32>
    %16 = arith.truncf %15 : vector<16x128xf32> to vector<16x128xbf16>
    %c0_12 = arith.constant 0 : index
    %c0_13 = arith.constant 0 : index
    %17 = vector.load %arg6[%c0_12, %c0_13] : memref<128x128xbf16, #tpu.memory_space<vmem>>, vector<128x128xbf16>
    %cst_14 = arith.constant dense<0.000000e+00> : vector<16x128xf32>
    %18 = tpu.matmul %16, %17, %cst_14 {dimension_numbers = #tpu.dot_dimension_numbers<[1], [0], [0], [1], [0, 0, 1, 1], [], []>} : vector<16x128xbf16>, vector<128x128xbf16>, vector<16x128xf32> -> vector<16x128xf32>
    %c0_15 = arith.constant 0 : index
    %c0_16 = arith.constant 0 : index
    %19 = vector.load %arg7[%c0_15, %c0_16] : memref<1x128xf32, #tpu.memory_space<vmem>>, vector<1x128xf32>
    %20 = vector.broadcast %19 : vector<1x128xf32> to vector<16x128xf32>
    %21 = arith.addf %18, %20 : vector<16x128xf32>
    %cst_17 = arith.constant 0.000000e+00 : f32
    %22 = vector.broadcast %cst_17 : f32 to vector<16x128xf32>
    %23 = arith.maximumf %21, %22 : vector<16x128xf32>
    %24 = arith.truncf %23 : vector<16x128xf32> to vector<16x128xbf16>
    %c0_18 = arith.constant 0 : index
    %c0_19 = arith.constant 0 : index
    %25 = vector.load %arg8[%c0_18, %c0_19] : memref<128x128xbf16, #tpu.memory_space<vmem>>, vector<128x128xbf16>
    %cst_20 = arith.constant dense<0.000000e+00> : vector<16x128xf32>
    %26 = tpu.matmul %24, %25, %cst_20 {dimension_numbers = #tpu.dot_dimension_numbers<[1], [0], [0], [1], [0, 0, 1, 1], [], []>} : vector<16x128xbf16>, vector<128x128xbf16>, vector<16x128xf32> -> vector<16x128xf32>
    %c0_21 = arith.constant 0 : index
    %c0_22 = arith.constant 0 : index
    %27 = vector.load %arg9[%c0_21, %c0_22] : memref<1x128xf32, #tpu.memory_space<vmem>>, vector<1x128xf32>
    %28 = vector.broadcast %27 : vector<1x128xf32> to vector<16x128xf32>
    %29 = arith.addf %26, %28 : vector<16x128xf32>
    %30 = tpu.iota {dimensions = array<i32: 1>} : vector<16x128xi32>
    %c10_i32 = arith.constant 10 : i32
    %31 = vector.broadcast %c10_i32 : i32 to vector<16x128xi32>
    %32 = arith.cmpi slt, %30, %31 : vector<16x128xi32>
    %cst_23 = arith.constant -1.000000e+30 : f32
    %33 = vector.broadcast %cst_23 : f32 to vector<16x128xf32>
    %34 = arith.select %32, %29, %33 : vector<16x128xi1>, vector<16x128xf32>
    %cst_24 = arith.constant dense<0xFF800000> : vector<16xf32>
    %35 = vector.multi_reduction <maximumf>, %34, %cst_24 [1] : vector<16x128xf32> to vector<16xf32>
    %36 = vector.shape_cast %35 : vector<16xf32> to vector<16x1xf32>
    %37 = vector.broadcast %36 : vector<16x1xf32> to vector<16x128xf32>
    %38 = arith.subf %34, %37 : vector<16x128xf32>
    %39 = math.exp %38 : vector<16x128xf32>
    %cst_25 = arith.constant dense<0.000000e+00> : vector<16xf32>
    %40 = vector.multi_reduction <add>, %39, %cst_25 [1] : vector<16x128xf32> to vector<16xf32>
    %41 = vector.shape_cast %40 : vector<16xf32> to vector<16x1xf32>
    %42 = math.log %41 : vector<16x1xf32>
    %43 = vector.broadcast %42 : vector<16x1xf32> to vector<16x128xf32>
    %44 = arith.subf %38, %43 : vector<16x128xf32>
    %c0_26 = arith.constant 0 : index
    %c0_27 = arith.constant 0 : index
    %45 = vector.load %arg10[%c0_26, %c0_27] : memref<16x128xf32, #tpu.memory_space<vmem>>, vector<16x128xf32>
    tpu.vector_store %arg10[%c0_26, %c0_27], %44 {strides = array<i32>} : memref<16x128xf32, #tpu.memory_space<vmem>>, vector<16x128xf32>,
    return
  }
  func.func @transform_0(%arg0: i32) -> (i32, i32) {
    %c0_i32 = arith.constant 0 : i32
    %c0_i32_0 = arith.constant 0 : i32
    return %arg0, %c0_i32 : i32, i32
  }
  func.func @transform_1(%arg0: i32) -> (i32, i32) {
    %c0_i32 = arith.constant 0 : i32
    %c0_i32_0 = arith.constant 0 : i32
    %c0_i32_1 = arith.constant 0 : i32
    return %c0_i32, %c0_i32_0 : i32, i32
  }
  func.func @transform_2(%arg0: i32) -> (i32, i32) {
    %c0_i32 = arith.constant 0 : i32
    %c0_i32_0 = arith.constant 0 : i32
    %c0_i32_1 = arith.constant 0 : i32
    return %c0_i32, %c0_i32_0 : i32, i32
  }
  func.func @transform_3(%arg0: i32) -> (i32, i32) {
    %c0_i32 = arith.constant 0 : i32
    %c0_i32_0 = arith.constant 0 : i32
    %c0_i32_1 = arith.constant 0 : i32
    return %c0_i32, %c0_i32_0 : i32, i32
  }
  func.func @transform_4(%arg0: i32) -> (i32, i32) {
    %c0_i32 = arith.constant 0 : i32
    %c0_i32_0 = arith.constant 0 : i32
    %c0_i32_1 = arith.constant 0 : i32
    return %c0_i32, %c0_i32_0 : i32, i32
  }
  func.func @transform_5(%arg0: i32) -> (i32, i32) {
    %c0_i32 = arith.constant 0 : i32
    %c0_i32_0 = arith.constant 0 : i32
    %c0_i32_1 = arith.constant 0 : i32
    return %c0_i32, %c0_i32_0 : i32, i32
  }
  func.func @transform_6(%arg0: i32) -> (i32, i32) {
    %c0_i32 = arith.constant 0 : i32
    %c0_i32_0 = arith.constant 0 : i32
    %c0_i32_1 = arith.constant 0 : i32
    return %c0_i32, %c0_i32_0 : i32, i32
  }
  func.func @transform_7(%arg0: i32) -> (i32, i32) {
    %c0_i32 = arith.constant 0 : i32
    %c0_i32_0 = arith.constant 0 : i32
    %c0_i32_1 = arith.constant 0 : i32
    return %c0_i32, %c0_i32_0 : i32, i32
  }
  func.func @transform_8(%arg0: i32) -> (i32, i32) {
    %c0_i32 = arith.constant 0 : i32
    %c0_i32_0 = arith.constant 0 : i32
    %c0_i32_1 = arith.constant 0 : i32
    return %c0_i32, %c0_i32_0 : i32, i32
  }
  func.func @transform_9(%arg0: i32) -> (i32, i32) {
    %c0_i32 = arith.constant 0 : i32
    %c0_i32_0 = arith.constant 0 : i32
    return %arg0, %c0_i32 : i32, i32
  }
}

</mosaic_0001>

<bundles_post_ra>
// kernel: net_forward.1
= control target key start
LH: loop header
LB: loop body
LE: loop exit
PB: predicated region body
PF: predicated region fallthrough
CT: control target
= control target key end

     0   :  { %14 = vsyncpa [#allocation3], 0  ;;  %s1659_s0 = inlined_call_operand.vmem [shape: bf16[16,784], index: 0, kind: input, shape index: {}]   ;;  %s1660_s1 = inlined_call_operand.hbm [shape: bf16[784,128], index: 1, kind: input, shape index: {}]   ;;  %s1661_s2 = inlined_call_operand.vmem [shape: f32[1,128], index: 2, kind: input, shape index: {}]   ;;  %s1662_s3 = inlined_call_operand.vmem [shape: bf16[128,128], index: 3, kind: input, shape index: {}]   ;;  %s1663_s4 = inlined_call_operand.vmem [shape: f32[1,128], index: 4, kind: input, shape index: {}]   ;;  %s1664_s5 = inlined_call_operand.vmem [shape: bf16[128,128], index: 5, kind: input, shape index: {}]   ;;  %s1665_s6 = inlined_call_operand.vmem [shape: f32[1,128], index: 6, kind: input, shape index: {}]   ;;  %s1666_s7 = inlined_call_operand.vmem [shape: bf16[128,128], index: 7, kind: input, shape index: {}]   ;;  %s1667_s8 = inlined_call_operand.hbm [shape: f32[1,128], index: 8, kind: input, shape index: {}]   ;;  %s1668_s9 = inlined_call_operand.vmem [shape: f32[16,128], index: 9, kind: output, shape index: {}]  }
   0x1   :  { %15 = vsyncpa [#allocation5], 0  ;;  %s1438_s30 = smov [#allocation2]   ;;  %s1390_s13 = scalar_lea.hbm %s1660_s1, 6272 }
   0x2   :  { %s23_s10 = sshll.u32 %s1438_s30, 4  ;;  %p1391_p0 = scmp.ne.s32.totalorder %s1660_s1, %s1390_s13  ;;  %s24_s10 = int_to_ptr.vmem [resolvable:$true] %s23_s10 }
   0x3   :  { %p1394_p1 = scmp.lt.u32.totalorder %s1390_s13, %s1660_s1 }
   0x5   :  { %p1396_p2 = pnand %p1394_p1, %p1391_p0 }
   0x7   :  { %1399 = shalt.err (!%p1396_p2)
}
   0x8   :  { %s1400_s18 = scalar_lea.vmem %s24_s10, 6272  ;;  %p1405_p4 = scmp.lt.s32.totalorder %s24_s10, %s24_s10 }
   0x9   :  { %p1401_p3 = scmp.ne.s32.totalorder %s24_s10, %s1400_s18  ;;  %p1406_p5 = scmp.lt.s32.totalorder %s1400_s18, %s1400_s18 }
   0xb   :  { %p1407_p6 = por %p1406_p5, %p1405_p4 }
   0xd   :  { %p1408_p7 = pnand %p1407_p6, %p1401_p3 }
   0xf   :  { %1411 = shalt.err (!%p1408_p7)
}
  0x10   :  { %s1439_s19 = smov 64   ;;  %s1440_s20 = smov 4  }
  0x11   :  { %29 = dma.hbm_to_vmem [thread:$0]  %s1660_s1, 6272, %s24_s10, [#allocation3], %s1439_s19, %s1439_s19, %s1440_s20  }
  0x12   :  { %s1441_s23 = smov [#allocation4]   ;;  %s1412_s27 = scalar_lea.hbm %s1667_s8, 16 }
  0x13   :  { %s48_s24 = sshll.u32 %s1441_s23, 4  ;;  %p1413_p8 = scmp.ne.s32.totalorder %s1667_s8, %s1412_s27  ;;  %s49_s24 = int_to_ptr.vmem [resolvable:$true] %s48_s24 }
  0x14   :  { %p1416_p9 = scmp.lt.u32.totalorder %s1412_s27, %s1667_s8 }
  0x16   :  { %p1418_p10 = pnand %p1416_p9, %p1413_p8 }
  0x18   :  { %1421 = shalt.err (!%p1418_p10)
}
  0x19   :  { %s1422_s12 = scalar_lea.vmem %s49_s24, 16  ;;  %s1426_s1 = scalar_lea.vmem %s49_s24, 32 }
  0x1a   :  { %p1423_p11 = scmp.ne.s32.totalorder %s49_s24, %s1422_s12  ;;  %p1427_p12 = scmp.lt.s32.totalorder %s49_s24, %s49_s24 }
  0x1b   :  { %p1428_p13 = scmp.lt.s32.totalorder %s1426_s1, %s1422_s12 }
  0x1d   :  { %p1429_p0 = por %p1428_p13, %p1427_p12 }
  0x1f   :  { %p1430_p1 = pnand %p1429_p0, %p1423_p11 }
  0x21   :  { %1433 = shalt.err (!%p1430_p1)
}
  0x22   :  { %51 = dma.hbm_to_vmem [thread:$0]  %s1667_s8, 16, %s49_s24, [#allocation5]  }
  0x23   :  { %1434 = dma.done.wait [#allocation3], 6272  }
  0x24   :  { %1435 = vsyncadd [#allocation3], 4294961024 }
  0x25   :  { %1436 = dma.done.wait [#allocation5], 16  }
  0x26   :  { %1437 = vsyncadd [#allocation5], 4294967280  ;;  %v1299_v0 = vld [vmem:[#allocation2 + $0x40] sm:$0xff]   ;;  %v1303_v4 = vld [vmem:[#allocation2 + $0x48] sm:$0xff]   ;;  %v1442_v38 = vmov 0.0   ;;  %vm1443_vm0 = vmmov 0  }
  0x27   :  { %v1300_v1 = vld [vmem:[#allocation2] sm:$0xff]   ;;  %1132 = vmatprep.subr.bf16.mxu0 %v1299_v0  ;;  %v1304_v5 = vld [vmem:[#allocation2 + $0x8] sm:$0xff]   ;;  %v1307_v8 = vld [vmem:[#allocation2 + $0x50] sm:$0xff]   ;;  %vm501_vm1 = vcmask 130048  }
  0x28   :  { %v1301_v2 = vld [vmem:[#allocation2 + $0xc0] sm:$0xff]   ;;  %1133 = vmatpush3.bf16.msra.mxu0 %v1300_v1  ;;  %v1305_v6 = vld [vmem:[#allocation2 + $0xc8] sm:$0xff]   ;;  %v1308_v9 = vld [vmem:[#allocation2 + $0x10] sm:$0xff]  }
  0x29   :  { %v1302_v3 = vld [vmem:[#allocation2 + $0x80] sm:$0xff]   ;;  %1154 = vmatprep.subr.bf16.mxu1 %v1301_v2  ;;  %1134 = vmatprep.subr.bf16.mxu0 %v1303_v4  ;;  %v1306_v7 = vld [vmem:[#allocation2 + $0x88] sm:$0xff]   ;;  %v1309_v10 = vld [vmem:[#allocation2 + $0xd0] sm:$0xff]  }
  0x2a   :  { %1155 = vmatpush3.bf16.msra.mxu1 %v1302_v3  ;;  %v1310_v11 = vld [vmem:[#allocation2 + $0x90] sm:$0xff]   ;;  %v1311_v12 = vld [vmem:[#allocation2 + $0x58] sm:$0xff]   ;;  %v1315_v16 = vld [vmem:[#allocation2 + $0x60] sm:$0xff]  }
  0x2b   :  { %1156 = vmatprep.subr.bf16.mxu1 %v1305_v6  ;;  %v1312_v13 = vld [vmem:[#allocation2 + $0x18] sm:$0xff]   ;;  %v1316_v17 = vld [vmem:[#allocation2 + $0x20] sm:$0xff]   ;;  %v1319_v20 = vld [vmem:[#allocation2 + $0x68] sm:$0xff]  }
  0x2c   :  { %1135 = vmatpush3.bf16.msra.mxu0 %v1304_v5  ;;  %v1313_v14 = vld [vmem:[#allocation2 + $0xd8] sm:$0xff]   ;;  %v1317_v18 = vld [vmem:[#allocation2 + $0xe0] sm:$0xff]   ;;  %v1320_v21 = vld [vmem:[#allocation2 + $0x28] sm:$0xff]  }
  0x2d   :  { %1136 = vmatprep.subr.bf16.mxu0 %v1307_v8  ;;  %v1314_v15 = vld [vmem:[#allocation2 + $0x98] sm:$0xff]   ;;  %v1318_v19 = vld [vmem:[#allocation2 + $0xa0] sm:$0xff]   ;;  %v1321_v22 = vld [vmem:[#allocation2 + $0xe8] sm:$0xff]  }
  0x2e   :  { %1157 = vmatpush3.bf16.msra.mxu1 %v1306_v7  ;;  %v1322_v23 = vld [vmem:[#allocation2 + $0xa8] sm:$0xff]   ;;  %v1323_v24 = vld [vmem:[#allocation2 + $0x70] sm:$0xff]   ;;  %v1327_v28 = vld [vmem:[#allocation2 + $0x78] sm:$0xff]  }
  0x2f   :  { %1158 = vmatprep.subr.bf16.mxu1 %v1309_v10  ;;  %v1324_v25 = vld [vmem:[#allocation2 + $0x30] sm:$0xff]   ;;  %v1328_v29 = vld [vmem:[#allocation2 + $0x38] sm:$0xff]   ;;  %v1332_v32 = vld [vmem:[%s1659_s0 + $0x4] ss:$28 sps:$4 sm:$0xff]  }
  0x30   :  { %1137 = vmatpush3.bf16.msra.mxu0 %v1308_v9  ;;  %v1325_v26 = vld [vmem:[#allocation2 + $0xf0] sm:$0xff]   ;;  %v1329_v30 = vld [vmem:[#allocation2 + $0xf8] sm:$0xff]   ;;  %537 = vmatprep.mubr.bf16.mxu0 %v1332_v32  ;;  %v1334_v34 = vld [vmem:[#allocation2 + $0x140] sm:$0xff]  }
  0x31   :  { %1138 = vmatprep.subr.bf16.mxu0 %v1311_v12  ;;  %v1326_v27 = vld [vmem:[#allocation2 + $0xb0] sm:$0xff]   ;;  %v1330_v31 = vld [vmem:[%s1659_s0] ss:$28 sps:$4 sm:$0xff]   ;;  %v1335_v35 = vld [vmem:[%s1659_s0 + $0x8] ss:$28 sps:$4 sm:$0xff]  }
  0x32   :  { %1159 = vmatpush3.bf16.msra.mxu1 %v1310_v11  ;;  %v1333_v33 = vld [vmem:[#allocation2 + $0xb8] sm:$0xff]   ;;  %v1337_v36 = vld [vmem:[%s1659_s0 + $0xc] ss:$28 sps:$4 sm:$0xff]   ;;  %v1338_v37 = vld [vmem:[#allocation2 + $0x100] sm:$0xff]  }
  0x33   :  { %1160 = vmatprep.subr.bf16.mxu1 %v1313_v14  ;;  %578 = vmatprep.mubr.bf16.mxu1 %v1337_v36  ;;  %v1339_v39 = vld [vmem:[#allocation2 + $0x148] sm:$0xff]   ;;  %v1341_v41 = vld [vmem:[#allocation2 + $0x150] sm:$0xff]   ;;  %v1343_v43 = vld [vmem:[#allocation2 + $0x158] sm:$0xff]  }
  0x34   :  { %1139 = vmatpush3.bf16.msra.mxu0 %v1312_v13  ;;  %v1340_v40 = vld [vmem:[#allocation2 + $0x108] sm:$0xff]   ;;  %v1342_v42 = vld [vmem:[#allocation2 + $0x110] sm:$0xff]   ;;  %v1344_v44 = vld [vmem:[#allocation2 + $0x118] sm:$0xff]  }
  0x35   :  { %1140 = vmatprep.subr.bf16.mxu0 %v1315_v16  ;;  %v1345_v45 = vld [vmem:[#allocation2 + $0x160] sm:$0xff]   ;;  %v1347_v47 = vld [vmem:[#allocation2 + $0x168] sm:$0xff]   ;;  %v1356_v50 = vld [vmem:[%s1659_s0 + $0x14] ss:$28 sps:$4 sm:$0xff]  }
  0x36   :  { %1161 = vmatpush3.bf16.msra.mxu1 %v1314_v15  ;;  %v1346_v46 = vld [vmem:[#allocation2 + $0x120] sm:$0xff]   ;;  %v1348_v49 = vld [vmem:[#allocation2 + $0x128] sm:$0xff]   ;;  %v1349_v51 = vld [vmem:[#allocation2 + $0x170] sm:$0xff]  }
  0x37   :  { %1162 = vmatprep.subr.bf16.mxu1 %v1317_v18  ;;  %v1353_v48 = vld [vmem:[#allocation2 + $0x180] sm:$0xff]   ;;  %v1357_v52 = vld [vmem:[%s1659_s0 + $0x18] ss:$28 sps:$4 sm:$0xff]   ;;  %v1354_v56 = vld [vmem:[%s1659_s0 + $0x10] ss:$28 sps:$4 sm:$0xff]  }
  0x38   :  { %1141 = vmatpush3.bf16.msra.mxu0 %v1316_v17  ;;  %v1350_v53 = vld [vmem:[#allocation2 + $0x130] sm:$0xff]   ;;  %v1351_v54 = vld [vmem:[#allocation2 + $0x178] sm:$0xff]   ;;  %v1358_v57 = vld [vmem:[%s1662_s3] sm:$0xff]  }
  0x39   :  { %1142 = vmatprep.subr.bf16.mxu0 %v1319_v20  ;;  %v1352_v55 = vld [vmem:[#allocation2 + $0x138] sm:$0xff]   ;;  %v1359_v58 = vld [vmem:[%s1662_s3 + $0x8] sm:$0xff]   ;;  %v1360_v59 = vld [vmem:[%s1662_s3 + $0x10] sm:$0xff]  }
  0x3a   :  { %1163 = vmatpush3.bf16.msra.mxu1 %v1318_v19  ;;  %v1361_v60 = vld [vmem:[%s1662_s3 + $0x18] sm:$0xff]   ;;  %v1362_v61 = vld [vmem:[%s1662_s3 + $0x20] sm:$0xff]   ;;  %v1363_v62 = vld [vmem:[%s1662_s3 + $0x28] sm:$0xff]  }
  0x3b   :  { %1164 = vmatprep.subr.bf16.mxu1 %v1321_v22  ;;  %v1364_v63 = vld [vmem:[%s1662_s3 + $0x30] sm:$0xff]   ;;  %v1365_v0 = vld [vmem:[%s1662_s3 + $0x38] sm:$0xff]   ;;  %v1366_v1 = vld [vmem:[%s1664_s5] sm:$0xff]  }
  0x3c   :  { %1143 = vmatpush3.bf16.msra.mxu0 %v1320_v21  ;;  %v1367_v2 = vld [vmem:[%s1664_s5 + $0x8] sm:$0xff]   ;;  %v1368_v3 = vld [vmem:[%s1664_s5 + $0x10] sm:$0xff]   ;;  %v1369_v4 = vld [vmem:[%s1664_s5 + $0x18] sm:$0xff]  }
  0x3d   :  { %1144 = vmatprep.subr.bf16.mxu0 %v1323_v24  ;;  %v1370_v5 = vld [vmem:[%s1664_s5 + $0x20] sm:$0xff]   ;;  %v1371_v6 = vld [vmem:[%s1664_s5 + $0x28] sm:$0xff]  }
  0x3e   :  { %1165 = vmatpush3.bf16.msra.mxu1 %v1322_v23  ;;  %v1047_v8 = vld [vmem:[%s1661_s2] ss:$0 sm:$0xff] }
  0x3f   :  { %1166 = vmatprep.subr.bf16.mxu1 %v1325_v26 }
  0x40   :  { %1145 = vmatpush3.bf16.msra.mxu0 %v1324_v25 }
  0x41   :  { %1146 = vmatprep.subr.bf16.mxu0 %v1327_v28 }
  0x42   :  { %1167 = vmatpush3.bf16.msra.mxu1 %v1326_v27 }
  0x43   :  { %1168 = vmatprep.subr.bf16.mxu1 %v1329_v30 }
  0x44   :  { %1147 = vmatpush3.bf16.msra.mxu0 %v1328_v29 }
  0x45   :  { %1176 = vmatprep.subr.bf16.mxu0 %v1334_v34 }
  0x46   :  { %1169 = vmatpush3.bf16.msra.mxu1 %v1333_v33 }
  0x47   :  { %538 = vmatmul.mubr.bf16.vlgmr.msra.gmra.mrb[0].mxu0 %v1330_v31  ;;  %1227 = vmatprep.subr.bf16.mxu1 %v1442_v38 }
  0x48   :  { %1177 = vmatpush3.bf16.msra.mxu0 %v1338_v37  ;;  %619 = vmatprep.mubr.bf16.mxu0 %v1356_v50  ;;  %v1105_v50 = vld [vmem:[%s1663_s4] ss:$0 sm:$0xff] }
  0x49   :  { %579 = vmatmul.mubr.bf16.vlgmr.msra.gmra.mrb[0].mxu1 %v1335_v35  ;;  %1178 = vmatprep.subr.bf16.mxu0 %v1339_v39 }
  0x4a   :  { %1229 = vmatprep.mubr.msk.bf16.mxu1 %vm1443_vm0, %v1442_v38  ;;  %1228 = vmatpush3.bf16.msra.mxu1 %v1353_v48  ;;  %v1378_v48 = vld [vmem:[%s1666_s7 + $0x20] sm:$0xff]  }
  0x4b   :  { %1233 = vmatprep.subr.bf16.mxu1 %v1442_v38 }
  0x4c   :  { %1179 = vmatpush3.bf16.msra.mxu0 %v1340_v40 }
  0x4d   :  { %1180 = vmatprep.subr.bf16.mxu0 %v1341_v41 }
  0x50   :  { %1181 = vmatpush3.bf16.msra.mxu0 %v1342_v42  ;;  %v1372_v42 = vld [vmem:[%s1664_s5 + $0x30] sm:$0xff]  }
  0x51   :  { %1182 = vmatprep.subr.bf16.mxu0 %v1343_v43  ;;  %1230 = vmatmul.mubr.msk.bf16.vlgmr.msra.gmra.mrb[4].mxu1 %vm501_vm1, %v1357_v52  ;;  %v1373_v43 = vld [vmem:[%s1664_s5 + $0x38] sm:$0xff]  }
  0x52   :  { %1249 = vmatprep.mubr.msk.bf16.mxu1 %vm1443_vm0, %v1442_v38  ;;  %1234 = vmatpush3.bf16.msra.mxu1 %v1358_v57 }
  0x53   :  { %1235 = vmatprep.subr.bf16.mxu1 %v1442_v38 }
  0x54   :  { %1183 = vmatpush3.bf16.msra.mxu0 %v1344_v44  ;;  %v1374_v44 = vld [vmem:[%s1666_s7] sm:$0xff]  }
  0x55   :  { %1184 = vmatprep.subr.bf16.mxu0 %v1345_v45  ;;  %v1375_v45 = vld [vmem:[%s1666_s7 + $0x8] sm:$0xff]  }
  0x56   :  { %1236 = vmatpush3.bf16.msra.mxu1 %v1359_v58 }
  0x57   :  { %1237 = vmatprep.subr.bf16.mxu1 %v1442_v38 }
  0x58   :  { %1185 = vmatpush3.bf16.msra.mxu0 %v1346_v46  ;;  %v1376_v46 = vld [vmem:[%s1666_s7 + $0x10] sm:$0xff]  }
  0x59   :  { %1186 = vmatprep.subr.bf16.mxu0 %v1347_v47  ;;  %v1377_v47 = vld [vmem:[%s1666_s7 + $0x18] sm:$0xff]  }
  0x5a   :  { %1238 = vmatpush3.bf16.msra.mxu1 %v1360_v59 }
  0x5b   :  { %1239 = vmatprep.subr.bf16.mxu1 %v1442_v38 }
  0x5c   :  { %1187 = vmatpush3.bf16.msra.mxu0 %v1348_v49  ;;  %v1379_v49 = vld [vmem:[%s1666_s7 + $0x28] sm:$0xff]  }
  0x5d   :  { %1188 = vmatprep.subr.bf16.mxu0 %v1349_v51 }
  0x5e   :  { %1240 = vmatpush3.bf16.msra.mxu1 %v1361_v60  ;;  %v1380_v60 = vld [vmem:[%s1666_s7 + $0x30] sm:$0xff]  }
  0x5f   :  { %1241 = vmatprep.subr.bf16.mxu1 %v1442_v38 }
  0x60   :  { %1189 = vmatpush3.bf16.msra.mxu0 %v1350_v53 }
  0x61   :  { %1190 = vmatprep.subr.bf16.mxu0 %v1351_v54 }
  0x62   :  { %1242 = vmatpush3.bf16.msra.mxu1 %v1362_v61  ;;  %v1381_v61 = vld [vmem:[%s1666_s7 + $0x38] sm:$0xff]  }
  0x63   :  { %1243 = vmatprep.subr.bf16.mxu1 %v1442_v38 }
  0x64   :  { %1191 = vmatpush3.bf16.msra.mxu0 %v1352_v55 }
  0x65   :  { %1253 = vmatprep.subr.bf16.mxu0 %v1442_v38 }
  0x66   :  { %1244 = vmatpush3.bf16.msra.mxu1 %v1363_v62  ;;  %v1114_v62 = vld [vmem:[%s1665_s6] ss:$0 sm:$0xff] }
  0x67   :  { %620 = vmatmul.mubr.bf16.vlgmr.msra.gmra.mrb[4].mxu0 %v1354_v56  ;;  %1245 = vmatprep.subr.bf16.mxu1 %v1442_v38 }
  0x68   :  { %1269 = vmatprep.mubr.msk.bf16.mxu0 %vm1443_vm0, %v1442_v38  ;;  %1254 = vmatpush3.bf16.msra.mxu0 %v1366_v1 }
  0x69   :  { %1255 = vmatprep.subr.bf16.mxu0 %v1442_v38 }
  0x6a   :  { %1246 = vmatpush3.bf16.msra.mxu1 %v1364_v63 }
  0x6b   :  { %1247 = vmatprep.subr.bf16.mxu1 %v1442_v38 }
  0x6c   :  { %1256 = vmatpush3.bf16.msra.mxu0 %v1367_v2 }
  0x6d   :  { %1257 = vmatprep.subr.bf16.mxu0 %v1442_v38 }
  0x6e   :  { %1248 = vmatpush3.bf16.msra.mxu1 %v1365_v0 }
  0x6f   :  { %1273 = vmatprep.subr.bf16.mxu1 %v1442_v38 }
  0x70   :  { %1258 = vmatpush3.bf16.msra.mxu0 %v1368_v3 }
  0x71   :  { %1259 = vmatprep.subr.bf16.mxu0 %v1442_v38 }
  0x74   :  { %1260 = vmatpush3.bf16.msra.mxu0 %v1369_v4 }
  0x75   :  { %1261 = vmatprep.subr.bf16.mxu0 %v1442_v38 }
  0x78   :  { %1262 = vmatpush3.bf16.msra.mxu0 %v1370_v5 }
  0x79   :  { %1263 = vmatprep.subr.bf16.mxu0 %v1442_v38 }
  0x7c   :  { %1264 = vmatpush3.bf16.msra.mxu0 %v1371_v6 }
  0x7d   :  { %1265 = vmatprep.subr.bf16.mxu0 %v1442_v38 }
  0x80   :  { %1266 = vmatpush3.bf16.msra.mxu0 %v1372_v42 }
  0x81   :  { %1267 = vmatprep.subr.bf16.mxu0 %v1442_v38 }
  0x84   :  { %1268 = vmatpush3.bf16.msra.mxu0 %v1373_v43 }
 0x11a   :  { %v1148_v7 = vpop.f32.mrb[0].mxu0 }
 0x11b   :  { %v1149_v9 = vpop.f32.mrb[1].mxu0 }
 0x11c   :  { %v1150_v10 = vadd.f32 %v1149_v9, %v1148_v7  ;;  %v1151_v11 = vpop.f32.mrb[2].mxu0  ;;  %v1170_v12 = vpop.f32.mrb[0].mxu1  ;;  %v1123_v9 = vld [vmem:[#allocation4] ss:$0 sm:$0xff] }
 0x11d   :  { %v1152_v13 = vpop.f32.mrb[3].mxu0  ;;  %v1171_v16 = vpop.f32.mrb[1].mxu1 }
 0x11e   :  { %v540_v14 = vadd.f32 %v1150_v10, %v1047_v8  ;;  %v1153_v15 = vadd.f32 %v1152_v13, %v1151_v11  ;;  %v1172_v17 = vadd.f32 %v1171_v16, %v1170_v12  ;;  %v1173_v18 = vpop.f32.mrb[2].mxu1 }
 0x11f   :  { %v1174_v20 = vpop.f32.mrb[3].mxu1 }
 0x120   :  { %v543_v19 = vadd.f32 %v1153_v15, %v1047_v8  ;;  %v581_v21 = vadd.f32 %v1172_v17, %v540_v14  ;;  %v1175_v22 = vadd.f32 %v1174_v20, %v1173_v18 }
 0x122   :  { %v584_v23 = vadd.f32 %v1175_v22, %v543_v19 }
 0x124   :  { %v662_v24 = vpop.f32.mrb[4].mxu1 }
 0x125   :  { %v1231_v25 = vpop.f32.mrb[5].mxu1 }
 0x126   :  { %v665_v26 = vpop.f32.mrb[6].mxu1 }
 0x127   :  { %v1232_v27 = vpop.f32.mrb[7].mxu1 }
 0x13a   :  { %v1192_v28 = vpop.f32.mrb[4].mxu0 }
 0x13b   :  { %v1193_v29 = vpop.f32.mrb[5].mxu0 }
 0x13c   :  { %v1194_v30 = vadd.f32 %v1193_v29, %v1192_v28  ;;  %v1195_v31 = vpop.f32.mrb[6].mxu0 }
 0x13d   :  { %v1196_v32 = vpop.f32.mrb[7].mxu0 }
 0x13e   :  { %v622_v33 = vadd.f32 %v1194_v30, %v581_v21  ;;  %v1197_v34 = vadd.f32 %v1196_v32, %v1195_v31 }
 0x140   :  { %v663_v35 = vadd.f32 %v662_v24, %v622_v33  ;;  %v625_v36 = vadd.f32 %v1197_v34, %v584_v23 }
 0x142   :  { %v666_v37 = vadd.f32 %v665_v26, %v625_v36  ;;  %v669_v39 = vmax.f32 %v663_v35, 0.0 }
 0x144   :  { %v670_v40 = vmax.f32 %v666_v37, 0.0 }
 0x146   :  { %v671_v41 = vpack.c.bf16 %v670_v40, %v669_v39 }
 0x148   :  { %1250 = vmatmul.mubr.bf16.vlgmr.msra.gmra.mrb[8].mxu1 %v671_v41 }
 0x149   :  { %1289 = vmatprep.mubr.msk.bf16.mxu1 %vm1443_vm0, %v1442_v38  ;;  %1274 = vmatpush3.bf16.msra.mxu1 %v1374_v44 }
 0x14a   :  { %1275 = vmatprep.subr.bf16.mxu1 %v1442_v38 }
 0x14d   :  { %1276 = vmatpush3.bf16.msra.mxu1 %v1375_v45 }
 0x14e   :  { %1277 = vmatprep.subr.bf16.mxu1 %v1442_v38 }
 0x151   :  { %1278 = vmatpush3.bf16.msra.mxu1 %v1376_v46 }
 0x152   :  { %1279 = vmatprep.subr.bf16.mxu1 %v1442_v38 }
 0x155   :  { %1280 = vmatpush3.bf16.msra.mxu1 %v1377_v47 }
 0x156   :  { %1281 = vmatprep.subr.bf16.mxu1 %v1442_v38 }
 0x159   :  { %1282 = vmatpush3.bf16.msra.mxu1 %v1378_v48 }
 0x15a   :  { %1283 = vmatprep.subr.bf16.mxu1 %v1442_v38 }
 0x15d   :  { %1284 = vmatpush3.bf16.msra.mxu1 %v1379_v49 }
 0x15e   :  { %1285 = vmatprep.subr.bf16.mxu1 %v1442_v38 }
 0x161   :  { %1286 = vmatpush3.bf16.msra.mxu1 %v1380_v60 }
 0x162   :  { %1287 = vmatprep.subr.bf16.mxu1 %v1442_v38  ;;  %v1014_v38 = vlaneseq }
 0x164   :  { %v1015_v8 = vand.u32 127, %v1014_v38 }
 0x165   :  { %1288 = vmatpush3.bf16.msra.mxu1 %v1381_v61 }
 0x166   :  { %vm1016_vm2 = vcmp.lt.s32.totalorder %v1015_v8, 10 }
 0x21b   :  { %v777_v51 = vpop.f32.mrb[8].mxu1 }
 0x21c   :  { %v778_v52 = vadd.f32 %v1105_v50, %v777_v51  ;;  %v1251_v53 = vpop.f32.mrb[9].mxu1 }
 0x21d   :  { %v780_v54 = vpop.f32.mrb[10].mxu1 }
 0x21e   :  { %v781_v55 = vadd.f32 %v1105_v50, %v780_v54  ;;  %v1252_v56 = vpop.f32.mrb[11].mxu1  ;;  %v784_v57 = vmax.f32 %v778_v52, 0.0 }
 0x220   :  { %v785_v58 = vmax.f32 %v781_v55, 0.0 }
 0x222   :  { %v786_v59 = vpack.c.bf16 %v785_v58, %v784_v57 }
 0x224   :  { %1270 = vmatmul.mubr.bf16.vlgmr.msra.gmra.mrb[8].mxu0 %v786_v59 }
 0x2f7   :  { %v892_v63 = vpop.f32.mrb[8].mxu0 }
 0x2f8   :  { %v893_v0 = vadd.f32 %v1114_v62, %v892_v63  ;;  %v1271_v1 = vpop.f32.mrb[9].mxu0 }
 0x2f9   :  { %v895_v2 = vpop.f32.mrb[10].mxu0 }
 0x2fa   :  { %v896_v3 = vadd.f32 %v1114_v62, %v895_v2  ;;  %v1272_v4 = vpop.f32.mrb[11].mxu0  ;;  %v899_v5 = vmax.f32 %v893_v0, 0.0 }
 0x2fc   :  { %v900_v6 = vmax.f32 %v896_v3, 0.0 }
 0x2fe   :  { %v901_v7 = vpack.c.bf16 %v900_v6, %v899_v5 }
 0x300   :  { %1290 = vmatmul.mubr.bf16.vlgmr.msra.gmra.mrb[12].mxu1 %v901_v7 }
 0x3d3   :  { %v1007_v10 = vpop.f32.mrb[12].mxu1 }
 0x3d4   :  { %v1008_v11 = vadd.f32 %v1123_v9, %v1007_v10  ;;  %v1291_v12 = vpop.f32.mrb[13].mxu1 }
 0x3d5   :  { %v1010_v13 = vpop.f32.mrb[14].mxu1 }
 0x3d6   :  { %v1011_v14 = vadd.f32 %v1123_v9, %v1010_v13  ;;  %v1292_v15 = vpop.f32.mrb[15].mxu1  ;;  %v1017_v16 = vsel %vm1016_vm2, %v1008_v11, -1e+30 }
 0x3d7   :  { %1019 = vmax.xlane.f32.xlu0 %v1017_v16 }
 0x3d8   :  { %v1018_v17 = vsel %vm1016_vm2, %v1011_v14, -1e+30 }
 0x3db   :  { %1021 = vmax.xlane.f32.xlu0 %v1018_v17 }
 0x464   :  { %v1020_v18 = vpop.xlane.xlu0 %1019 }
 0x465   :  { %v1023_v19 = vsub.f32 %v1017_v16, %v1020_v18 }
 0x467   :  { %v1025_v20 = vmul.f32 1.442695, %v1023_v19 }
 0x468   :  { %v1022_v21 = vpop.xlane.xlu0 %1021 }
 0x469   :  { %v1024_v22 = vsub.f32 %v1018_v17, %v1022_v21  ;;  %1382 = vpow2.f32 %v1025_v20 }
 0x46b   :  { %v1027_v23 = vmul.f32 1.442695, %v1024_v22 }
 0x46d   :  { %1384 = vpow2.f32 %v1027_v23 }
 0x473   :  { %v1383_v24 = vpop.eup %1382 }
 0x474   :  { %1029 = vadd.xlane.f32.xlu1 %v1383_v24 }
 0x477   :  { %v1385_v25 = vpop.eup %1384 }
 0x478   :  { %1031 = vadd.xlane.f32.xlu1 %v1385_v25 }
 0x501   :  { %v1030_v26 = vpop.xlane.xlu1 %1029 }
 0x502   :  { %1386 = vlog2.f32 %v1030_v26 }
 0x505   :  { %v1032_v27 = vpop.xlane.xlu1 %1031 }
 0x506   :  { %1388 = vlog2.f32 %v1032_v27 }
 0x50c   :  { %v1387_v28 = vpop.eup %1386 }
 0x50d   :  { %v1034_v29 = vmul.f32 0.6931472, %v1387_v28 }
 0x50f   :  { %v1037_v30 = vsub.f32 %v1023_v19, %v1034_v29 }
 0x510   :  { %v1389_v31 = vpop.eup %1388 }
 0x511   :  { %1039 = vst [vmem:[%s1668_s9] sm:$0xff] %v1037_v30  ;;  %v1036_v32 = vmul.f32 0.6931472, %v1389_v31 }
 0x513   :  { %v1038_v33 = vsub.f32 %v1024_v22, %v1036_v32 }
 0x515   :  { %1040 = vst [vmem:[%s1668_s9 + $0x8] sm:$0xff] %v1038_v33 }
 0x516   :  { %1045 = vsyncpa [#allocation3], 1 }
 0x517   :  { %1046 = vsyncpa [#allocation5], 1 }

</bundles_post_ra>
